<compile_context>
chip_gen: v7x
topology: tpu7x:2x2x1
jax: 0.10.0
libtpu: 0.0.40
codegen_flags: <defaults>
</compile_context>

<pallas_src>
import functools

import jax
import jax.numpy as jnp
from jax import lax
from jax.experimental import pallas as pl
from jax.experimental.pallas import tpu as pltpu


def _round_up(x, m):
    return ((x + m - 1) // m) * m


def lstm_classifier_kernel(x_ref, wih_ref, whh_ref, b_ref, wfc_ref, bfc_ref,
                           h0_ref, c0_ref, out_ref, gx_sc, h_sc, c_sc,
                           *, H, Bp, Tc, T_total, n_chunks, unroll):
    """One time-chunk of the LSTM forward + final FC on the last chunk.

    x_ref   : (Tc*Bp, E)   bf16, time-major chunk (rows t*Bp:(t+1)*Bp = step t)
    wih_ref : (E, 4H)      bf16   W_ih^T, gate order [i, f, o, g]
    whh_ref : (H, 4H)      bf16   W_hh^T, gate order [i, f, o, g]
    b_ref   : (1, 4H)      f32    b_ih + b_hh, gate order [i, f, o, g]
    wfc_ref : (H, TGTP)    bf16   W_fc^T, lane-padded
    bfc_ref : (1, TGTP)    f32    b_fc, lane-padded
    h0_ref  : (Bp, H)      f32
    c0_ref  : (Bp, H)      f32
    out_ref : (Bp, TGTP)   f32
    gx_sc   : (Tc*Bp, 4H)  f32 VMEM scratch (input-projected gates, this chunk)
    h_sc/c_sc : (Bp, H)    f32 VMEM scratch, persistent h/c carry across chunks
    """
    ci = pl.program_id(0)
    needs_mask = (n_chunks * Tc != T_total)  # Python bool (static)

    @pl.when(ci == 0)
    def _():
        h_sc[...] = h0_ref[...]
        c_sc[...] = c0_ref[...]

    # Phase 1: input projection for ALL steps of this chunk in one MXU matmul.
    gx_sc[...] = (jnp.dot(x_ref[...], wih_ref[...],
                          preferred_element_type=jnp.float32)
                  + b_ref[...])

    whh = whh_ref[...]        # hoisted load; resident across the serial loop
    base = ci * Tc            # global step index of this chunk's first step

    # Phase 2: serial recurrence; only h @ W_hh^T + nonlinearities remain on
    # the critical path.
    def step(t, carry):
        h, c = carry
        row = pl.multiple_of(t * Bp, Bp)
        gates = gx_sc[pl.ds(row, Bp), :] + jnp.dot(
            h.astype(jnp.bfloat16), whh, preferred_element_type=jnp.float32)
        # Gate layout (reordered in wrapper): [i, f, o | g].
        # sigmoid(x) = 0.5*(tanh(0.5*x)+1): one EUP pass over 3H + VPU fixups.
        sig = 0.5 * (jnp.tanh(0.5 * gates[:, 0:3 * H]) + 1.0)
        i_g = sig[:, 0 * H:1 * H]
        f_g = sig[:, 1 * H:2 * H]
        o_g = sig[:, 2 * H:3 * H]
        g_g = jnp.tanh(gates[:, 3 * H:4 * H])
        c_new = f_g * c + i_g * g_g
        h_new = o_g * jnp.tanh(c_new)
        if needs_mask:
            valid = (base + t) < T_total   # ignore zero-padded tail steps
            h_new = jnp.where(valid, h_new, h)
            c_new = jnp.where(valid, c_new, c)
        return h_new, c_new

    h_last, c_last = lax.fori_loop(0, Tc, step, (h_sc[...], c_sc[...]),
                                   unroll=unroll)
    h_sc[...] = h_last
    c_sc[...] = c_last

    # output[:, -1] -> fc (squeeze(dim=1) is a no-op on the 2D tensor)
    @pl.when(ci == n_chunks - 1)
    def _():
        out_ref[...] = (jnp.dot(h_last.astype(jnp.bfloat16), wfc_ref[...],
                                preferred_element_type=jnp.float32)
                        + bfc_ref[...]).astype(out_ref.dtype)


def prepare_params(params):
    """One-time weight prep (hoisted out of the forward path).

    Reorders LSTM gates from PyTorch's [i, f, g, o] to [i, f, o, g], fuses the
    biases, pre-transposes and casts matmul operands to bf16, and lane-pads the
    FC weight/bias.
    """
    H = params["w_hh"].shape[1]
    E = params["embed"].shape[1]
    tgt = params["w_fc"].shape[0]
    TGTP = _round_up(tgt, 128)

    def reorder(w):  # rows [i, f, g, o] -> [i, f, o, g]
        return jnp.concatenate(
            [w[0 * H:2 * H], w[3 * H:4 * H], w[2 * H:3 * H]], axis=0)

    w_ih_r = reorder(params["w_ih"])                       # (4H, E)
    w_hh_r = reorder(params["w_hh"])                       # (4H, H)
    b_r = reorder(params["b_ih"] + params["b_hh"])         # (4H,)

    return {
        "embed_bf16": params["embed"].astype(jnp.bfloat16),
        "wih_t": jnp.transpose(w_ih_r).astype(jnp.bfloat16),     # (E, 4H)
        "whh_t": jnp.transpose(w_hh_r).astype(jnp.bfloat16),     # (H, 4H)
        "bias": b_r.reshape(1, 4 * H).astype(jnp.float32),       # (1, 4H)
        "wfc_t": jnp.pad(jnp.transpose(params["w_fc"]),
                         ((0, 0), (0, TGTP - tgt))).astype(jnp.bfloat16),
        "bfc": jnp.pad(params["b_fc"],
                       (0, TGTP - tgt)).reshape(1, TGTP).astype(jnp.float32),
        "E": E, "H": H, "tgt": tgt, "TGTP": TGTP,
    }


def two_class_classifier_forward(text, h_state, prep, *, tc_max=64, unroll=8):
    """text: (B, T) int32 token ids; h_state: (h0, c0) each (1, B, H)."""
    B, T = text.shape
    E, H, tgt, TGTP = prep["E"], prep["H"], prep["tgt"], prep["TGTP"]

    Bp = _round_up(B, 8)                 # pad batch to one sublane group
    Tc = min(T, tc_max)                  # time-chunk length (VMEM-bounded)
    n_chunks = pl.cdiv(T, Tc)
    T_pad = n_chunks * Tc

    # Embedding lookup directly in time-major order (transpose the tiny id
    # matrix, not the embedded tensor); bf16 throughout; pad batch+time.
    embed_tm = jnp.take(prep["embed_bf16"], jnp.transpose(text), axis=0)  # (T,B,E) bf16
    x = jnp.pad(embed_tm, ((0, T_pad - T), (0, Bp - B), (0, 0)))          # (Tp,Bp,E)
    x = x.reshape(T_pad * Bp, E)

    h0 = jnp.pad(jnp.squeeze(h_state[0], axis=0).astype(jnp.float32),
                 ((0, Bp - B), (0, 0)))                                   # (Bp, H)
    c0 = jnp.pad(jnp.squeeze(h_state[1], axis=0).astype(jnp.float32),
                 ((0, Bp - B), (0, 0)))                                   # (Bp, H)

    kernel = functools.partial(
        lstm_classifier_kernel, H=H, Bp=Bp, Tc=Tc, T_total=T,
        n_chunks=n_chunks, unroll=min(unroll, Tc))

    out_pad = pl.pallas_call(
        kernel,
        out_shape=jax.ShapeDtypeStruct((Bp, TGTP), jnp.float32),
        grid_spec=pltpu.PrefetchScalarGridSpec(
            num_scalar_prefetch=0,
            grid=(n_chunks,),
            in_specs=[
                pl.BlockSpec((Tc * Bp, E), lambda i: (i, 0)),    # x chunk
                pl.BlockSpec((E, 4 * H), lambda i: (0, 0)),      # W_ih^T
                pl.BlockSpec((H, 4 * H), lambda i: (0, 0)),      # W_hh^T
                pl.BlockSpec((1, 4 * H), lambda i: (0, 0)),      # fused bias
                pl.BlockSpec((H, TGTP), lambda i: (0, 0)),       # W_fc^T (padded)
                pl.BlockSpec((1, TGTP), lambda i: (0, 0)),       # b_fc (padded)
                pl.BlockSpec((Bp, H), lambda i: (0, 0)),         # h0
                pl.BlockSpec((Bp, H), lambda i: (0, 0)),         # c0
            ],
            out_specs=pl.BlockSpec((Bp, TGTP), lambda i: (0, 0)),
            scratch_shapes=[
                pltpu.VMEM((Tc * Bp, 4 * H), jnp.float32),       # gates_x chunk
                pltpu.VMEM((Bp, H), jnp.float32),                # h carry
                pltpu.VMEM((Bp, H), jnp.float32),                # c carry
            ],
        ),
        compiler_params=pltpu.CompilerParams(
            dimension_semantics=("arbitrary",),   # serial recurrence over time
            vmem_limit_bytes=32 * 1024 * 1024),
    )(x, prep["wih_t"], prep["whh_t"], prep["bias"],
      prep["wfc_t"], prep["bfc"], h0, c0)

    return out_pad[:B, :tgt]


def reference_forward(text, h_state, params):
    """Pure-JAX f32 reference matching the PyTorch module (gate order i,f,g,o)."""
    H = params["w_hh"].shape[1]
    embed = jnp.take(params["embed"], text, axis=0)      # (B, T, E)
    h = jnp.squeeze(h_state[0], axis=0)
    c = jnp.squeeze(h_state[1], axis=0)
    for t_i in range(text.shape[1]):
        x = embed[:, t_i]
        gates = (x @ params["w_ih"].T + h @ params["w_hh"].T
                 + params["b_ih"] + params["b_hh"])
        i_g = jax.nn.sigmoid(gates[:, 0 * H:1 * H])
        f_g = jax.nn.sigmoid(gates[:, 1 * H:2 * H])
        g_g = jnp.tanh(gates[:, 2 * H:3 * H])
        o_g = jax.nn.sigmoid(gates[:, 3 * H:4 * H])
        c = f_g * c + i_g * g_g
        h = o_g * jnp.tanh(c)
    return h @ params["w_fc"].T + params["b_fc"]


def init_params(key, vocab_size, embed_size, hidden_size, tgt_size):
    ks = jax.random.split(key, 7)
    scale = 0.1
    return {
        "embed": scale * jax.random.normal(ks[0], (vocab_size, embed_size), jnp.float32),
        "w_ih": scale * jax.random.normal(ks[1], (4 * hidden_size, embed_size), jnp.float32),
        "w_hh": scale * jax.random.normal(ks[2], (4 * hidden_size, hidden_size), jnp.float32),
        "b_ih": scale * jax.random.normal(ks[3], (4 * hidden_size,), jnp.float32),
        "b_hh": scale * jax.random.normal(ks[4], (4 * hidden_size,), jnp.float32),
        "w_fc": scale * jax.random.normal(ks[5], (tgt_size, hidden_size), jnp.float32),
        "b_fc": scale * jax.random.normal(ks[6], (tgt_size,), jnp.float32),
    }


if __name__ == "__main__":
    vocab_size, embed_size, hidden_size, tgt_size = 50, 32, 32, 2
    B, T = 2, 8

    key = jax.random.PRNGKey(0)
    k_param, k_text = jax.random.split(key)
    params = init_params(k_param, vocab_size, embed_size, hidden_size, tgt_size)
    prep = prepare_params(params)      # hoisted one-time weight prep

    text = jax.random.randint(k_text, (B, T), 0, vocab_size, dtype=jnp.int32)
    h_state = (jnp.zeros((1, B, hidden_size), jnp.float32),
               jnp.zeros((1, B, hidden_size), jnp.float32))

    out = two_class_classifier_forward(text, h_state, prep)
    jax.block_until_ready(out)
    assert out.shape == (B, tgt_size)

    ref = reference_forward(text, h_state, params)
    assert jnp.allclose(out, ref, atol=2e-2, rtol=2e-2), (out, ref)

    print("KERNEL_OK")
</pallas_src>

<mosaic_0001>
module attributes {stable_mosaic.version = 11 : i64} {
  func.func @lstm_classifier_kernel(%arg0: i32, %arg1: memref<64x32xbf16, #tpu.memory_space<vmem>>, %arg2: memref<32x128xbf16, #tpu.memory_space<vmem>>, %arg3: memref<32x128xbf16, #tpu.memory_space<vmem>>, %arg4: memref<1x128xf32, #tpu.memory_space<vmem>>, %arg5: memref<32x128xbf16, #tpu.memory_space<vmem>>, %arg6: memref<1x128xf32, #tpu.memory_space<vmem>>, %arg7: memref<8x32xf32, #tpu.memory_space<vmem>>, %arg8: memref<8x32xf32, #tpu.memory_space<vmem>>, %arg9: memref<8x128xf32, #tpu.memory_space<vmem>>, %arg10: memref<64x128xf32, #tpu.memory_space<vmem>>, %arg11: memref<8x32xf32, #tpu.memory_space<vmem>>, %arg12: memref<8x32xf32, #tpu.memory_space<vmem>>) attributes {dimension_semantics = [#tpu.dimension_semantics<arbitrary>], iteration_bounds = array<i64: 1>, scalar_prefetch = 0 : i64, scratch_operands = 3 : i64, tpu.core_type = #tpu.core_type<tc>, window_params = [{transform_indices = @transform_0, window_bounds = array<i64: 64, 32>}, {pipeline_mode = #tpu.pipeline_mode<synchronous>, transform_indices = @transform_1, window_bounds = array<i64: 32, 128>}, {pipeline_mode = #tpu.pipeline_mode<synchronous>, transform_indices = @transform_2, window_bounds = array<i64: 32, 128>}, {pipeline_mode = #tpu.pipeline_mode<synchronous>, transform_indices = @transform_3, window_bounds = array<i64: 1, 128>}, {pipeline_mode = #tpu.pipeline_mode<synchronous>, transform_indices = @transform_4, window_bounds = array<i64: 32, 128>}, {pipeline_mode = #tpu.pipeline_mode<synchronous>, transform_indices = @transform_5, window_bounds = array<i64: 1, 128>}, {pipeline_mode = #tpu.pipeline_mode<synchronous>, transform_indices = @transform_6, window_bounds = array<i64: 8, 32>}, {pipeline_mode = #tpu.pipeline_mode<synchronous>, transform_indices = @transform_7, window_bounds = array<i64: 8, 32>}, {pipeline_mode = #tpu.pipeline_mode<synchronous>, transform_indices = @transform_8, window_bounds = array<i64: 8, 128>}]} {
    %c0_i32 = arith.constant 0 : i32
    %0 = arith.cmpi eq, %arg0, %c0_i32 : i32
    %1 = arith.extui %0 : i1 to i32
    %c0_i32_0 = arith.constant 0 : i32
    %2 = arith.cmpi ne, %1, %c0_i32_0 : i32
    scf.if %2 {
      %c0_69 = arith.constant 0 : index
      %c0_70 = arith.constant 0 : index
      %218 = vector.load %arg7[%c0_69, %c0_70] : memref<8x32xf32, #tpu.memory_space<vmem>>, vector<8x32xf32>
      %c0_71 = arith.constant 0 : index
      %c0_72 = arith.constant 0 : index
      %219 = vector.load %arg11[%c0_71, %c0_72] : memref<8x32xf32, #tpu.memory_space<vmem>>, vector<8x32xf32>
      tpu.vector_store %arg11[%c0_71, %c0_72], %218 {strides = array<i32>} : memref<8x32xf32, #tpu.memory_space<vmem>>, vector<8x32xf32>,
      %c0_73 = arith.constant 0 : index
      %c0_74 = arith.constant 0 : index
      %220 = vector.load %arg8[%c0_73, %c0_74] : memref<8x32xf32, #tpu.memory_space<vmem>>, vector<8x32xf32>
      %c0_75 = arith.constant 0 : index
      %c0_76 = arith.constant 0 : index
      %221 = vector.load %arg12[%c0_75, %c0_76] : memref<8x32xf32, #tpu.memory_space<vmem>>, vector<8x32xf32>
      tpu.vector_store %arg12[%c0_75, %c0_76], %220 {strides = array<i32>} : memref<8x32xf32, #tpu.memory_space<vmem>>, vector<8x32xf32>,
    } else {
    }
    %c0 = arith.constant 0 : index
    %c0_1 = arith.constant 0 : index
    %3 = vector.load %arg1[%c0, %c0_1] : memref<64x32xbf16, #tpu.memory_space<vmem>>, vector<64x32xbf16>
    %c0_2 = arith.constant 0 : index
    %c0_3 = arith.constant 0 : index
    %4 = vector.load %arg2[%c0_2, %c0_3] : memref<32x128xbf16, #tpu.memory_space<vmem>>, vector<32x128xbf16>
    %cst = arith.constant dense<0.000000e+00> : vector<64x128xf32>
    %5 = tpu.matmul %3, %4, %cst {dimension_numbers = #tpu.dot_dimension_numbers<[1], [0], [0], [1], [0, 0, 1, 1], [], []>} : vector<64x32xbf16>, vector<32x128xbf16>, vector<64x128xf32> -> vector<64x128xf32>
    %c0_4 = arith.constant 0 : index
    %c0_5 = arith.constant 0 : index
    %6 = vector.load %arg4[%c0_4, %c0_5] : memref<1x128xf32, #tpu.memory_space<vmem>>, vector<1x128xf32>
    %7 = vector.broadcast %6 : vector<1x128xf32> to vector<64x128xf32>
    %8 = arith.addf %5, %7 : vector<64x128xf32>
    %c0_6 = arith.constant 0 : index
    %c0_7 = arith.constant 0 : index
    %9 = vector.load %arg10[%c0_6, %c0_7] : memref<64x128xf32, #tpu.memory_space<vmem>>, vector<64x128xf32>
    tpu.vector_store %arg10[%c0_6, %c0_7], %8 {strides = array<i32>} : memref<64x128xf32, #tpu.memory_space<vmem>>, vector<64x128xf32>,
    %c0_8 = arith.constant 0 : index
    %c0_9 = arith.constant 0 : index
    %10 = vector.load %arg3[%c0_8, %c0_9] : memref<32x128xbf16, #tpu.memory_space<vmem>>, vector<32x128xbf16>
    %c0_10 = arith.constant 0 : index
    %c0_11 = arith.constant 0 : index
    %11 = vector.load %arg11[%c0_10, %c0_11] : memref<8x32xf32, #tpu.memory_space<vmem>>, vector<8x32xf32>
    %c0_12 = arith.constant 0 : index
    %c0_13 = arith.constant 0 : index
    %12 = vector.load %arg12[%c0_12, %c0_13] : memref<8x32xf32, #tpu.memory_space<vmem>>, vector<8x32xf32>
    %c0_i32_14 = arith.constant 0 : i32
    %c8_i32 = arith.constant 8 : i32
    %13 = arith.muli %c0_i32_14, %c8_i32 : i32
    %14 = tpu.assume_multiple %13, 8 : i32
    %15 = arith.index_cast %14 : i32 to index
    %c0_15 = arith.constant 0 : index
    %16 = vector.load %arg10[%15, %c0_15] : memref<64x128xf32, #tpu.memory_space<vmem>>, vector<8x128xf32>
    %17 = arith.truncf %11 : vector<8x32xf32> to vector<8x32xbf16>
    %cst_16 = arith.constant dense<0.000000e+00> : vector<8x128xf32>
    %18 = tpu.matmul %17, %10, %cst_16 {dimension_numbers = #tpu.dot_dimension_numbers<[1], [0], [0], [1], [0, 0, 1, 1], [], []>} : vector<8x32xbf16>, vector<32x128xbf16>, vector<8x128xf32> -> vector<8x128xf32>
    %19 = arith.addf %16, %18 : vector<8x128xf32>
    %20 = vector.extract_strided_slice %19 {offsets = [0, 0], sizes = [8, 96], strides = [1, 1]} : vector<8x128xf32> to vector<8x96xf32>
    %cst_17 = arith.constant 5.000000e-01 : f32
    %21 = vector.broadcast %cst_17 : f32 to vector<8x96xf32>
    %22 = arith.mulf %21, %20 : vector<8x96xf32>
    %23 = math.tanh %22 : vector<8x96xf32>
    %cst_18 = arith.constant 1.000000e+00 : f32
    %24 = vector.broadcast %cst_18 : f32 to vector<8x96xf32>
    %25 = arith.addf %23, %24 : vector<8x96xf32>
    %cst_19 = arith.constant 5.000000e-01 : f32
    %26 = vector.broadcast %cst_19 : f32 to vector<8x96xf32>
    %27 = arith.mulf %26, %25 : vector<8x96xf32>
    %28 = vector.extract_strided_slice %27 {offsets = [0, 0], sizes = [8, 32], strides = [1, 1]} : vector<8x96xf32> to vector<8x32xf32>
    %29 = vector.extract_strided_slice %27 {offsets = [0, 32], sizes = [8, 32], strides = [1, 1]} : vector<8x96xf32> to vector<8x32xf32>
    %30 = vector.extract_strided_slice %27 {offsets = [0, 64], sizes = [8, 32], strides = [1, 1]} : vector<8x96xf32> to vector<8x32xf32>
    %31 = vector.extract_strided_slice %19 {offsets = [0, 96], sizes = [8, 32], strides = [1, 1]} : vector<8x128xf32> to vector<8x32xf32>
    %32 = math.tanh %31 : vector<8x32xf32>
    %33 = arith.mulf %29, %12 : vector<8x32xf32>
    %34 = arith.mulf %28, %32 : vector<8x32xf32>
    %35 = arith.addf %33, %34 : vector<8x32xf32>
    %36 = math.tanh %35 : vector<8x32xf32>
    %37 = arith.mulf %30, %36 : vector<8x32xf32>
    %c1_i32 = arith.constant 1 : i32
    %c8_i32_20 = arith.constant 8 : i32
    %38 = arith.muli %c1_i32, %c8_i32_20 : i32
    %39 = tpu.assume_multiple %38, 8 : i32
    %40 = arith.index_cast %39 : i32 to index
    %c0_21 = arith.constant 0 : index
    %41 = vector.load %arg10[%40, %c0_21] : memref<64x128xf32, #tpu.memory_space<vmem>>, vector<8x128xf32>
    %42 = arith.truncf %37 : vector<8x32xf32> to vector<8x32xbf16>
    %cst_22 = arith.constant dense<0.000000e+00> : vector<8x128xf32>
    %43 = tpu.matmul %42, %10, %cst_22 {dimension_numbers = #tpu.dot_dimension_numbers<[1], [0], [0], [1], [0, 0, 1, 1], [], []>} : vector<8x32xbf16>, vector<32x128xbf16>, vector<8x128xf32> -> vector<8x128xf32>
    %44 = arith.addf %41, %43 : vector<8x128xf32>
    %45 = vector.extract_strided_slice %44 {offsets = [0, 0], sizes = [8, 96], strides = [1, 1]} : vector<8x128xf32> to vector<8x96xf32>
    %cst_23 = arith.constant 5.000000e-01 : f32
    %46 = vector.broadcast %cst_23 : f32 to vector<8x96xf32>
    %47 = arith.mulf %46, %45 : vector<8x96xf32>
    %48 = math.tanh %47 : vector<8x96xf32>
    %cst_24 = arith.constant 1.000000e+00 : f32
    %49 = vector.broadcast %cst_24 : f32 to vector<8x96xf32>
    %50 = arith.addf %48, %49 : vector<8x96xf32>
    %cst_25 = arith.constant 5.000000e-01 : f32
    %51 = vector.broadcast %cst_25 : f32 to vector<8x96xf32>
    %52 = arith.mulf %51, %50 : vector<8x96xf32>
    %53 = vector.extract_strided_slice %52 {offsets = [0, 0], sizes = [8, 32], strides = [1, 1]} : vector<8x96xf32> to vector<8x32xf32>
    %54 = vector.extract_strided_slice %52 {offsets = [0, 32], sizes = [8, 32], strides = [1, 1]} : vector<8x96xf32> to vector<8x32xf32>
    %55 = vector.extract_strided_slice %52 {offsets = [0, 64], sizes = [8, 32], strides = [1, 1]} : vector<8x96xf32> to vector<8x32xf32>
    %56 = vector.extract_strided_slice %44 {offsets = [0, 96], sizes = [8, 32], strides = [1, 1]} : vector<8x128xf32> to vector<8x32xf32>
    %57 = math.tanh %56 : vector<8x32xf32>
    %58 = arith.mulf %54, %35 : vector<8x32xf32>
    %59 = arith.mulf %53, %57 : vector<8x32xf32>
    %60 = arith.addf %58, %59 : vector<8x32xf32>
    %61 = math.tanh %60 : vector<8x32xf32>
    %62 = arith.mulf %55, %61 : vector<8x32xf32>
    %c2_i32 = arith.constant 2 : i32
    %c8_i32_26 = arith.constant 8 : i32
    %63 = arith.muli %c2_i32, %c8_i32_26 : i32
    %64 = tpu.assume_multiple %63, 8 : i32
    %65 = arith.index_cast %64 : i32 to index
    %c0_27 = arith.constant 0 : index
    %66 = vector.load %arg10[%65, %c0_27] : memref<64x128xf32, #tpu.memory_space<vmem>>, vector<8x128xf32>
    %67 = arith.truncf %62 : vector<8x32xf32> to vector<8x32xbf16>
    %cst_28 = arith.constant dense<0.000000e+00> : vector<8x128xf32>
    %68 = tpu.matmul %67, %10, %cst_28 {dimension_numbers = #tpu.dot_dimension_numbers<[1], [0], [0], [1], [0, 0, 1, 1], [], []>} : vector<8x32xbf16>, vector<32x128xbf16>, vector<8x128xf32> -> vector<8x128xf32>
    %69 = arith.addf %66, %68 : vector<8x128xf32>
    %70 = vector.extract_strided_slice %69 {offsets = [0, 0], sizes = [8, 96], strides = [1, 1]} : vector<8x128xf32> to vector<8x96xf32>
    %cst_29 = arith.constant 5.000000e-01 : f32
    %71 = vector.broadcast %cst_29 : f32 to vector<8x96xf32>
    %72 = arith.mulf %71, %70 : vector<8x96xf32>
    %73 = math.tanh %72 : vector<8x96xf32>
    %cst_30 = arith.constant 1.000000e+00 : f32
    %74 = vector.broadcast %cst_30 : f32 to vector<8x96xf32>
    %75 = arith.addf %73, %74 : vector<8x96xf32>
    %cst_31 = arith.constant 5.000000e-01 : f32
    %76 = vector.broadcast %cst_31 : f32 to vector<8x96xf32>
    %77 = arith.mulf %76, %75 : vector<8x96xf32>
    %78 = vector.extract_strided_slice %77 {offsets = [0, 0], sizes = [8, 32], strides = [1, 1]} : vector<8x96xf32> to vector<8x32xf32>
    %79 = vector.extract_strided_slice %77 {offsets = [0, 32], sizes = [8, 32], strides = [1, 1]} : vector<8x96xf32> to vector<8x32xf32>
    %80 = vector.extract_strided_slice %77 {offsets = [0, 64], sizes = [8, 32], strides = [1, 1]} : vector<8x96xf32> to vector<8x32xf32>
    %81 = vector.extract_strided_slice %69 {offsets = [0, 96], sizes = [8, 32], strides = [1, 1]} : vector<8x128xf32> to vector<8x32xf32>
    %82 = math.tanh %81 : vector<8x32xf32>
    %83 = arith.mulf %79, %60 : vector<8x32xf32>
    %84 = arith.mulf %78, %82 : vector<8x32xf32>
    %85 = arith.addf %83, %84 : vector<8x32xf32>
    %86 = math.tanh %85 : vector<8x32xf32>
    %87 = arith.mulf %80, %86 : vector<8x32xf32>
    %c3_i32 = arith.constant 3 : i32
    %c8_i32_32 = arith.constant 8 : i32
    %88 = arith.muli %c3_i32, %c8_i32_32 : i32
    %89 = tpu.assume_multiple %88, 8 : i32
    %90 = arith.index_cast %89 : i32 to index
    %c0_33 = arith.constant 0 : index
    %91 = vector.load %arg10[%90, %c0_33] : memref<64x128xf32, #tpu.memory_space<vmem>>, vector<8x128xf32>
    %92 = arith.truncf %87 : vector<8x32xf32> to vector<8x32xbf16>
    %cst_34 = arith.constant dense<0.000000e+00> : vector<8x128xf32>
    %93 = tpu.matmul %92, %10, %cst_34 {dimension_numbers = #tpu.dot_dimension_numbers<[1], [0], [0], [1], [0, 0, 1, 1], [], []>} : vector<8x32xbf16>, vector<32x128xbf16>, vector<8x128xf32> -> vector<8x128xf32>
    %94 = arith.addf %91, %93 : vector<8x128xf32>
    %95 = vector.extract_strided_slice %94 {offsets = [0, 0], sizes = [8, 96], strides = [1, 1]} : vector<8x128xf32> to vector<8x96xf32>
    %cst_35 = arith.constant 5.000000e-01 : f32
    %96 = vector.broadcast %cst_35 : f32 to vector<8x96xf32>
    %97 = arith.mulf %96, %95 : vector<8x96xf32>
    %98 = math.tanh %97 : vector<8x96xf32>
    %cst_36 = arith.constant 1.000000e+00 : f32
    %99 = vector.broadcast %cst_36 : f32 to vector<8x96xf32>
    %100 = arith.addf %98, %99 : vector<8x96xf32>
    %cst_37 = arith.constant 5.000000e-01 : f32
    %101 = vector.broadcast %cst_37 : f32 to vector<8x96xf32>
    %102 = arith.mulf %101, %100 : vector<8x96xf32>
    %103 = vector.extract_strided_slice %102 {offsets = [0, 0], sizes = [8, 32], strides = [1, 1]} : vector<8x96xf32> to vector<8x32xf32>
    %104 = vector.extract_strided_slice %102 {offsets = [0, 32], sizes = [8, 32], strides = [1, 1]} : vector<8x96xf32> to vector<8x32xf32>
    %105 = vector.extract_strided_slice %102 {offsets = [0, 64], sizes = [8, 32], strides = [1, 1]} : vector<8x96xf32> to vector<8x32xf32>
    %106 = vector.extract_strided_slice %94 {offsets = [0, 96], sizes = [8, 32], strides = [1, 1]} : vector<8x128xf32> to vector<8x32xf32>
    %107 = math.tanh %106 : vector<8x32xf32>
    %108 = arith.mulf %104, %85 : vector<8x32xf32>
    %109 = arith.mulf %103, %107 : vector<8x32xf32>
    %110 = arith.addf %108, %109 : vector<8x32xf32>
    %111 = math.tanh %110 : vector<8x32xf32>
    %112 = arith.mulf %105, %111 : vector<8x32xf32>
    %c4_i32 = arith.constant 4 : i32
    %c8_i32_38 = arith.constant 8 : i32
    %113 = arith.muli %c4_i32, %c8_i32_38 : i32
    %114 = tpu.assume_multiple %113, 8 : i32
    %115 = arith.index_cast %114 : i32 to index
    %c0_39 = arith.constant 0 : index
    %116 = vector.load %arg10[%115, %c0_39] : memref<64x128xf32, #tpu.memory_space<vmem>>, vector<8x128xf32>
    %117 = arith.truncf %112 : vector<8x32xf32> to vector<8x32xbf16>
    %cst_40 = arith.constant dense<0.000000e+00> : vector<8x128xf32>
    %118 = tpu.matmul %117, %10, %cst_40 {dimension_numbers = #tpu.dot_dimension_numbers<[1], [0], [0], [1], [0, 0, 1, 1], [], []>} : vector<8x32xbf16>, vector<32x128xbf16>, vector<8x128xf32> -> vector<8x128xf32>
    %119 = arith.addf %116, %118 : vector<8x128xf32>
    %120 = vector.extract_strided_slice %119 {offsets = [0, 0], sizes = [8, 96], strides = [1, 1]} : vector<8x128xf32> to vector<8x96xf32>
    %cst_41 = arith.constant 5.000000e-01 : f32
    %121 = vector.broadcast %cst_41 : f32 to vector<8x96xf32>
    %122 = arith.mulf %121, %120 : vector<8x96xf32>
    %123 = math.tanh %122 : vector<8x96xf32>
    %cst_42 = arith.constant 1.000000e+00 : f32
    %124 = vector.broadcast %cst_42 : f32 to vector<8x96xf32>
    %125 = arith.addf %123, %124 : vector<8x96xf32>
    %cst_43 = arith.constant 5.000000e-01 : f32
    %126 = vector.broadcast %cst_43 : f32 to vector<8x96xf32>
    %127 = arith.mulf %126, %125 : vector<8x96xf32>
    %128 = vector.extract_strided_slice %127 {offsets = [0, 0], sizes = [8, 32], strides = [1, 1]} : vector<8x96xf32> to vector<8x32xf32>
    %129 = vector.extract_strided_slice %127 {offsets = [0, 32], sizes = [8, 32], strides = [1, 1]} : vector<8x96xf32> to vector<8x32xf32>
    %130 = vector.extract_strided_slice %127 {offsets = [0, 64], sizes = [8, 32], strides = [1, 1]} : vector<8x96xf32> to vector<8x32xf32>
    %131 = vector.extract_strided_slice %119 {offsets = [0, 96], sizes = [8, 32], strides = [1, 1]} : vector<8x128xf32> to vector<8x32xf32>
    %132 = math.tanh %131 : vector<8x32xf32>
    %133 = arith.mulf %129, %110 : vector<8x32xf32>
    %134 = arith.mulf %128, %132 : vector<8x32xf32>
    %135 = arith.addf %133, %134 : vector<8x32xf32>
    %136 = math.tanh %135 : vector<8x32xf32>
    %137 = arith.mulf %130, %136 : vector<8x32xf32>
    %c5_i32 = arith.constant 5 : i32
    %c8_i32_44 = arith.constant 8 : i32
    %138 = arith.muli %c5_i32, %c8_i32_44 : i32
    %139 = tpu.assume_multiple %138, 8 : i32
    %140 = arith.index_cast %139 : i32 to index
    %c0_45 = arith.constant 0 : index
    %141 = vector.load %arg10[%140, %c0_45] : memref<64x128xf32, #tpu.memory_space<vmem>>, vector<8x128xf32>
    %142 = arith.truncf %137 : vector<8x32xf32> to vector<8x32xbf16>
    %cst_46 = arith.constant dense<0.000000e+00> : vector<8x128xf32>
    %143 = tpu.matmul %142, %10, %cst_46 {dimension_numbers = #tpu.dot_dimension_numbers<[1], [0], [0], [1], [0, 0, 1, 1], [], []>} : vector<8x32xbf16>, vector<32x128xbf16>, vector<8x128xf32> -> vector<8x128xf32>
    %144 = arith.addf %141, %143 : vector<8x128xf32>
    %145 = vector.extract_strided_slice %144 {offsets = [0, 0], sizes = [8, 96], strides = [1, 1]} : vector<8x128xf32> to vector<8x96xf32>
    %cst_47 = arith.constant 5.000000e-01 : f32
    %146 = vector.broadcast %cst_47 : f32 to vector<8x96xf32>
    %147 = arith.mulf %146, %145 : vector<8x96xf32>
    %148 = math.tanh %147 : vector<8x96xf32>
    %cst_48 = arith.constant 1.000000e+00 : f32
    %149 = vector.broadcast %cst_48 : f32 to vector<8x96xf32>
    %150 = arith.addf %148, %149 : vector<8x96xf32>
    %cst_49 = arith.constant 5.000000e-01 : f32
    %151 = vector.broadcast %cst_49 : f32 to vector<8x96xf32>
    %152 = arith.mulf %151, %150 : vector<8x96xf32>
    %153 = vector.extract_strided_slice %152 {offsets = [0, 0], sizes = [8, 32], strides = [1, 1]} : vector<8x96xf32> to vector<8x32xf32>
    %154 = vector.extract_strided_slice %152 {offsets = [0, 32], sizes = [8, 32], strides = [1, 1]} : vector<8x96xf32> to vector<8x32xf32>
    %155 = vector.extract_strided_slice %152 {offsets = [0, 64], sizes = [8, 32], strides = [1, 1]} : vector<8x96xf32> to vector<8x32xf32>
    %156 = vector.extract_strided_slice %144 {offsets = [0, 96], sizes = [8, 32], strides = [1, 1]} : vector<8x128xf32> to vector<8x32xf32>
    %157 = math.tanh %156 : vector<8x32xf32>
    %158 = arith.mulf %154, %135 : vector<8x32xf32>
    %159 = arith.mulf %153, %157 : vector<8x32xf32>
    %160 = arith.addf %158, %159 : vector<8x32xf32>
    %161 = math.tanh %160 : vector<8x32xf32>
    %162 = arith.mulf %155, %161 : vector<8x32xf32>
    %c6_i32 = arith.constant 6 : i32
    %c8_i32_50 = arith.constant 8 : i32
    %163 = arith.muli %c6_i32, %c8_i32_50 : i32
    %164 = tpu.assume_multiple %163, 8 : i32
    %165 = arith.index_cast %164 : i32 to index
    %c0_51 = arith.constant 0 : index
    %166 = vector.load %arg10[%165, %c0_51] : memref<64x128xf32, #tpu.memory_space<vmem>>, vector<8x128xf32>
    %167 = arith.truncf %162 : vector<8x32xf32> to vector<8x32xbf16>
    %cst_52 = arith.constant dense<0.000000e+00> : vector<8x128xf32>
    %168 = tpu.matmul %167, %10, %cst_52 {dimension_numbers = #tpu.dot_dimension_numbers<[1], [0], [0], [1], [0, 0, 1, 1], [], []>} : vector<8x32xbf16>, vector<32x128xbf16>, vector<8x128xf32> -> vector<8x128xf32>
    %169 = arith.addf %166, %168 : vector<8x128xf32>
    %170 = vector.extract_strided_slice %169 {offsets = [0, 0], sizes = [8, 96], strides = [1, 1]} : vector<8x128xf32> to vector<8x96xf32>
    %cst_53 = arith.constant 5.000000e-01 : f32
    %171 = vector.broadcast %cst_53 : f32 to vector<8x96xf32>
    %172 = arith.mulf %171, %170 : vector<8x96xf32>
    %173 = math.tanh %172 : vector<8x96xf32>
    %cst_54 = arith.constant 1.000000e+00 : f32
    %174 = vector.broadcast %cst_54 : f32 to vector<8x96xf32>
    %175 = arith.addf %173, %174 : vector<8x96xf32>
    %cst_55 = arith.constant 5.000000e-01 : f32
    %176 = vector.broadcast %cst_55 : f32 to vector<8x96xf32>
    %177 = arith.mulf %176, %175 : vector<8x96xf32>
    %178 = vector.extract_strided_slice %177 {offsets = [0, 0], sizes = [8, 32], strides = [1, 1]} : vector<8x96xf32> to vector<8x32xf32>
    %179 = vector.extract_strided_slice %177 {offsets = [0, 32], sizes = [8, 32], strides = [1, 1]} : vector<8x96xf32> to vector<8x32xf32>
    %180 = vector.extract_strided_slice %177 {offsets = [0, 64], sizes = [8, 32], strides = [1, 1]} : vector<8x96xf32> to vector<8x32xf32>
    %181 = vector.extract_strided_slice %169 {offsets = [0, 96], sizes = [8, 32], strides = [1, 1]} : vector<8x128xf32> to vector<8x32xf32>
    %182 = math.tanh %181 : vector<8x32xf32>
    %183 = arith.mulf %179, %160 : vector<8x32xf32>
    %184 = arith.mulf %178, %182 : vector<8x32xf32>
    %185 = arith.addf %183, %184 : vector<8x32xf32>
    %186 = math.tanh %185 : vector<8x32xf32>
    %187 = arith.mulf %180, %186 : vector<8x32xf32>
    %c7_i32 = arith.constant 7 : i32
    %c8_i32_56 = arith.constant 8 : i32
    %188 = arith.muli %c7_i32, %c8_i32_56 : i32
    %189 = tpu.assume_multiple %188, 8 : i32
    %190 = arith.index_cast %189 : i32 to index
    %c0_57 = arith.constant 0 : index
    %191 = vector.load %arg10[%190, %c0_57] : memref<64x128xf32, #tpu.memory_space<vmem>>, vector<8x128xf32>
    %192 = arith.truncf %187 : vector<8x32xf32> to vector<8x32xbf16>
    %cst_58 = arith.constant dense<0.000000e+00> : vector<8x128xf32>
    %193 = tpu.matmul %192, %10, %cst_58 {dimension_numbers = #tpu.dot_dimension_numbers<[1], [0], [0], [1], [0, 0, 1, 1], [], []>} : vector<8x32xbf16>, vector<32x128xbf16>, vector<8x128xf32> -> vector<8x128xf32>
    %194 = arith.addf %191, %193 : vector<8x128xf32>
    %195 = vector.extract_strided_slice %194 {offsets = [0, 0], sizes = [8, 96], strides = [1, 1]} : vector<8x128xf32> to vector<8x96xf32>
    %cst_59 = arith.constant 5.000000e-01 : f32
    %196 = vector.broadcast %cst_59 : f32 to vector<8x96xf32>
    %197 = arith.mulf %196, %195 : vector<8x96xf32>
    %198 = math.tanh %197 : vector<8x96xf32>
    %cst_60 = arith.constant 1.000000e+00 : f32
    %199 = vector.broadcast %cst_60 : f32 to vector<8x96xf32>
    %200 = arith.addf %198, %199 : vector<8x96xf32>
    %cst_61 = arith.constant 5.000000e-01 : f32
    %201 = vector.broadcast %cst_61 : f32 to vector<8x96xf32>
    %202 = arith.mulf %201, %200 : vector<8x96xf32>
    %203 = vector.extract_strided_slice %202 {offsets = [0, 0], sizes = [8, 32], strides = [1, 1]} : vector<8x96xf32> to vector<8x32xf32>
    %204 = vector.extract_strided_slice %202 {offsets = [0, 32], sizes = [8, 32], strides = [1, 1]} : vector<8x96xf32> to vector<8x32xf32>
    %205 = vector.extract_strided_slice %202 {offsets = [0, 64], sizes = [8, 32], strides = [1, 1]} : vector<8x96xf32> to vector<8x32xf32>
    %206 = vector.extract_strided_slice %194 {offsets = [0, 96], sizes = [8, 32], strides = [1, 1]} : vector<8x128xf32> to vector<8x32xf32>
    %207 = math.tanh %206 : vector<8x32xf32>
    %208 = arith.mulf %204, %185 : vector<8x32xf32>
    %209 = arith.mulf %203, %207 : vector<8x32xf32>
    %210 = arith.addf %208, %209 : vector<8x32xf32>
    %211 = math.tanh %210 : vector<8x32xf32>
    %212 = arith.mulf %205, %211 : vector<8x32xf32>
    %c8_i32_62 = arith.constant 8 : i32
    %c0_63 = arith.constant 0 : index
    %c0_64 = arith.constant 0 : index
    %213 = vector.load %arg11[%c0_63, %c0_64] : memref<8x32xf32, #tpu.memory_space<vmem>>, vector<8x32xf32>
    tpu.vector_store %arg11[%c0_63, %c0_64], %212 {strides = array<i32>} : memref<8x32xf32, #tpu.memory_space<vmem>>, vector<8x32xf32>,
    %c0_65 = arith.constant 0 : index
    %c0_66 = arith.constant 0 : index
    %214 = vector.load %arg12[%c0_65, %c0_66] : memref<8x32xf32, #tpu.memory_space<vmem>>, vector<8x32xf32>
    tpu.vector_store %arg12[%c0_65, %c0_66], %210 {strides = array<i32>} : memref<8x32xf32, #tpu.memory_space<vmem>>, vector<8x32xf32>,
    %c0_i32_67 = arith.constant 0 : i32
    %215 = arith.cmpi eq, %arg0, %c0_i32_67 : i32
    %216 = arith.extui %215 : i1 to i32
    %c0_i32_68 = arith.constant 0 : i32
    %217 = arith.cmpi ne, %216, %c0_i32_68 : i32
    scf.if %217 {
      %218 = arith.truncf %212 : vector<8x32xf32> to vector<8x32xbf16>
      %c0_69 = arith.constant 0 : index
      %c0_70 = arith.constant 0 : index
      %219 = vector.load %arg5[%c0_69, %c0_70] : memref<32x128xbf16, #tpu.memory_space<vmem>>, vector<32x128xbf16>
      %cst_71 = arith.constant dense<0.000000e+00> : vector<8x128xf32>
      %220 = tpu.matmul %218, %219, %cst_71 {dimension_numbers = #tpu.dot_dimension_numbers<[1], [0], [0], [1], [0, 0, 1, 1], [], []>} : vector<8x32xbf16>, vector<32x128xbf16>, vector<8x128xf32> -> vector<8x128xf32>
      %c0_72 = arith.constant 0 : index
      %c0_73 = arith.constant 0 : index
      %221 = vector.load %arg6[%c0_72, %c0_73] : memref<1x128xf32, #tpu.memory_space<vmem>>, vector<1x128xf32>
      %222 = vector.broadcast %221 : vector<1x128xf32> to vector<8x128xf32>
      %223 = arith.addf %220, %222 : vector<8x128xf32>
      %c0_74 = arith.constant 0 : index
      %c0_75 = arith.constant 0 : index
      %224 = vector.load %arg9[%c0_74, %c0_75] : memref<8x128xf32, #tpu.memory_space<vmem>>, vector<8x128xf32>
      tpu.vector_store %arg9[%c0_74, %c0_75], %223 {strides = array<i32>} : memref<8x128xf32, #tpu.memory_space<vmem>>, vector<8x128xf32>,
    } else {
    }
    return
  }
  func.func @transform_0(%arg0: i32) -> (i32, i32) {
    %c0_i32 = arith.constant 0 : i32
    %c0_i32_0 = arith.constant 0 : i32
    return %arg0, %c0_i32 : i32, i32
  }
  func.func @transform_1(%arg0: i32) -> (i32, i32) {
    %c0_i32 = arith.constant 0 : i32
    %c0_i32_0 = arith.constant 0 : i32
    %c0_i32_1 = arith.constant 0 : i32
    return %c0_i32, %c0_i32_0 : i32, i32
  }
  func.func @transform_2(%arg0: i32) -> (i32, i32) {
    %c0_i32 = arith.constant 0 : i32
    %c0_i32_0 = arith.constant 0 : i32
    %c0_i32_1 = arith.constant 0 : i32
    return %c0_i32, %c0_i32_0 : i32, i32
  }
  func.func @transform_3(%arg0: i32) -> (i32, i32) {
    %c0_i32 = arith.constant 0 : i32
    %c0_i32_0 = arith.constant 0 : i32
    %c0_i32_1 = arith.constant 0 : i32
    return %c0_i32, %c0_i32_0 : i32, i32
  }
  func.func @transform_4(%arg0: i32) -> (i32, i32) {
    %c0_i32 = arith.constant 0 : i32
    %c0_i32_0 = arith.constant 0 : i32
    %c0_i32_1 = arith.constant 0 : i32
    return %c0_i32, %c0_i32_0 : i32, i32
  }
  func.func @transform_5(%arg0: i32) -> (i32, i32) {
    %c0_i32 = arith.constant 0 : i32
    %c0_i32_0 = arith.constant 0 : i32
    %c0_i32_1 = arith.constant 0 : i32
    return %c0_i32, %c0_i32_0 : i32, i32
  }
  func.func @transform_6(%arg0: i32) -> (i32, i32) {
    %c0_i32 = arith.constant 0 : i32
    %c0_i32_0 = arith.constant 0 : i32
    %c0_i32_1 = arith.constant 0 : i32
    return %c0_i32, %c0_i32_0 : i32, i32
  }
  func.func @transform_7(%arg0: i32) -> (i32, i32) {
    %c0_i32 = arith.constant 0 : i32
    %c0_i32_0 = arith.constant 0 : i32
    %c0_i32_1 = arith.constant 0 : i32
    return %c0_i32, %c0_i32_0 : i32, i32
  }
  func.func @transform_8(%arg0: i32) -> (i32, i32) {
    %c0_i32 = arith.constant 0 : i32
    %c0_i32_0 = arith.constant 0 : i32
    %c0_i32_1 = arith.constant 0 : i32
    return %c0_i32, %c0_i32_0 : i32, i32
  }
}

</mosaic_0001>

<bundles_post_ra>
// kernel: tpu_custom_call.1
= control target key start
LH: loop header
LB: loop body
LE: loop exit
PB: predicated region body
PF: predicated region fallthrough
CT: control target
= control target key end

     0   :  { %v1099_v1 = vmov 0.0   ;;  %vm36_vm0 = vcmask 261120   ;;  %vm1100_vm1 = vmmov 0   ;;  %s1339_s0 = inlined_call_operand.vmem [shape: bf16[64,32], index: 0, kind: input, shape index: {}]   ;;  %s1340_s1 = inlined_call_operand.vmem [shape: bf16[32,128], index: 1, kind: input, shape index: {}]   ;;  %s1341_s2 = inlined_call_operand.vmem [shape: bf16[32,128], index: 2, kind: input, shape index: {}]   ;;  %s1342_s3 = inlined_call_operand.vmem [shape: f32[1,128], index: 3, kind: input, shape index: {}]   ;;  %s1343_s4 = inlined_call_operand.vmem [shape: bf16[32,128], index: 4, kind: input, shape index: {}]   ;;  %s1344_s5 = inlined_call_operand.vmem [shape: f32[1,128], index: 5, kind: input, shape index: {}]   ;;  %s1345_s6 = inlined_call_operand.vmem [shape: f32[8,32], index: 6, kind: input, shape index: {}]   ;;  %s1346_s7 = inlined_call_operand.vmem [shape: f32[8,32], index: 7, kind: input, shape index: {}]   ;;  %s1347_s8 = inlined_call_operand.hbm [shape: f32[8,128], index: 8, kind: output, shape index: {}]  }
   0x1   :  { %v1017_v0 = vld [vmem:[%s1340_s1] sm:$0xff]   ;;  %939 = vmatprep.subr.bf16.mxu1 %v1099_v1  ;;  %v1019_v3 = vld [vmem:[%s1340_s1 + $0x8] sm:$0xff]   ;;  %943 = vmatprep.mubr.msk.bf16.mxu1 %vm1100_vm1, %v1099_v1 }
   0x2   :  { %v1157_v2 = vld [vmem:[%s1341_s2] sm:$0xff]   ;;  %927 = vmatprep.subr.bf16.mxu0 %v1017_v0  ;;  %v1166_v4 = vld [vmem:[%s1341_s2 + $0x8] sm:$0xff]  }
   0x3   :  { %928 = vmatpush3.bf16.msra.mxu0 %v1017_v0  ;;  %940 = vmatpush3.bf16.msra.mxu1 %v1157_v2  ;;  %v1021_v5 = vld [vmem:[%s1339_s0] sm:$0xff]   ;;  %v1022_v6 = vld [vmem:[%s1339_s0 + $0x8] sm:$0xff]  }
   0x4   :  { %929 = vmatprep.subr.bf16.mxu0 %v1019_v3  ;;  %941 = vmatprep.subr.bf16.mxu1 %v1099_v1  ;;  %v35_v7 = vld [vmem:[%s1345_s6] sm:$0xff] }
   0x5   :  { %931 = vmatprep.mubr.msk.bf16.mxu0 %vm36_vm0, %v1021_v5  ;;  %37 = vst.msk [vmem:[#allocation3] sm:$0xff] %vm36_vm0, %v35_v7 }
   0x7   :  { %930 = vmatpush3.bf16.msra.mxu0 %v1019_v3  ;;  %942 = vmatpush3.bf16.msra.mxu1 %v1166_v4 }
   0x8   :  { %947 = vmatprep.subr.bf16.mxu1 %v1099_v1  ;;  %955 = vmatprep.subr.bf16.mxu0 %v1099_v1 }
   0x9   :  { %13 = vsyncpa [#allocation6], 0  ;;  %v38_v10 = vld [vmem:[%s1346_s7] sm:$0xff]  ;;  %s1101_s7 = smov 32   ;;  %v1023_v55 = vld [vmem:[%s1339_s0 + $0x10] sm:$0xff]   ;;  %s1103_s27 = smov 96  }
   0xa   :  { %932 = vmatmul.mubr.msk.bf16.vlgmr.msra.gmra.mrb[0].mxu0 %vm36_vm0, %v1022_v6  ;;  %39 = vst.msk [vmem:[#allocation4] sm:$0xff] %vm36_vm0, %v38_v10  ;;  %v1206_v12 = vld [vmem:[%s1342_s3] ss:$0 sm:$0xff]  ;;  %s1102_s3 = smov 64   ;;  %v1024_v56 = vld [vmem:[%s1339_s0 + $0x18] sm:$0xff]   ;;  %s1104_s29 = smov [#allocation5]  }
   0xb   :  { %956 = vmatpush3.bf16.msra.mxu0 %v1157_v2  ;;  %935 = vmatprep.mubr.msk.bf16.mxu0 %vm36_vm0, %v1023_v55  ;;  %s861_s30 = sshll.u32 %s1104_s29, 4  ;;  %s862_s30 = int_to_ptr.vmem [resolvable:$true] %s861_s30 }
   0xc   :  { %957 = vmatprep.subr.bf16.mxu0 %v1099_v1  ;;  %v181_v8 = vld [vmem:[#allocation3] sm:$0xff]  ;;  %s1075_s9 = scalar_lea.vmem %s862_s30, 128  ;;  %p1080_p1 = scmp.lt.s32.totalorder %s862_s30, %s862_s30 }
   0xd   :  { %v184_v9 = vpack.c.bf16 %v181_v8, %v181_v8  ;;  %p1076_p0 = scmp.ne.s32.totalorder %s862_s30, %s1075_s9  ;;  %p1081_p2 = scmp.lt.s32.totalorder %s1075_s9, %s1075_s9 }
   0xf   :  { %958 = vmatpush3.bf16.msra.mxu0 %v1166_v4  ;;  %944 = vmatmul.mubr.msk.bf16.vlgmr.msra.gmra.mrb[0].mxu1 %vm36_vm0, %v184_v9  ;;  %p1082_p3 = por %p1081_p2, %p1080_p1 }
  0x10   :  { %971 = vmatprep.subr.bf16.mxu0 %v1099_v1  ;;  %948 = vmatpush3.bf16.msra.mxu1 %v1157_v2 }
  0x11   :  { %951 = vmatprep.mubr.msk.bf16.mxu1 %vm1100_vm1, %v1099_v1  ;;  %949 = vmatprep.subr.bf16.mxu1 %v1099_v1  ;;  %v182_v23 = vld [vmem:[#allocation4] sm:$0xff]  ;;  %p1083_p4 = pnand %p1082_p3, %p1076_p0 }
  0x12   :  { %936 = vmatmul.mubr.msk.bf16.gmra.mrb[4].mxu0 %vm36_vm0, %v1024_v56 }
  0x13   :  { %959 = vmatprep.mubr.msk.bf16.mxu0 %vm1100_vm1, %v1099_v1 }
  0x14   :  { %950 = vmatpush3.bf16.msra.mxu1 %v1166_v4 }
  0x15   :  { %963 = vmatprep.subr.bf16.mxu1 %v1099_v1 }
  0xdd   :  { %v1201_v11 = vpop.f32.mrb[0].mxu0 }
  0xde   :  { %v138_v13 = vpop.f32.mrb[1].mxu0  ;;  %v147_v5 = vadd.f32 %v1201_v11, %v1206_v12 }
  0xdf   :  { %v1208_v14 = vpop.f32.mrb[2].mxu0  ;;  %v139_v16 = vadd.f32 %v1206_v12, %v138_v13 }
  0xe0   :  { %v141_v15 = vpop.f32.mrb[3].mxu0 }
  0xe1   :  { %v142_v39 = vadd.f32 %v1206_v12, %v141_v15 }
  0xe2   :  { %v234_v17 = vpop.f32.mrb[0].mxu1 }
  0xe3   :  { %v240_v18 = vadd.f32 %v234_v17, %v139_v16  ;;  %v945_v19 = vpop.f32.mrb[1].mxu1 }
  0xe4   :  { %v237_v20 = vpop.f32.mrb[2].mxu1 }
  0xe5   :  { %1027 = vtanh.f32 %v240_v18  ;;  %v946_v21 = vpop.f32.mrb[3].mxu1  ;;  %v241_v24 = vmul.f32 0.5, %v240_v18  ;;  %v1238_v61 = vpop.f32.mrb[4].mxu0 }
  0xe6   :  { %v1240_v62 = vpop.f32.mrb[5].mxu0 }
  0xe7   :  { %1029 = vtanh.f32 %v241_v24  ;;  %v1242_v63 = vpop.f32.mrb[6].mxu0 }
  0xe8   :  { %v1244_v0 = vpop.f32.mrb[7].mxu0 }
  0xef   :  { %v1028_v22 = vpop.eup %1027 }
  0xf0   :  { %252 = vrot.lane.b32.xlu0 %v1028_v22, %s1101_s7 }
  0xf1   :  { %v1030_v25 = vpop.eup %1029 }
  0xf2   :  { %v243_v26 = vadd.f32 1.0, %v1030_v25 }
  0xf4   :  { %247 = vrot.lane.b32.xlu0 %v182_v23, %s1101_s7  ;;  %v244_v27 = vmul.f32 0.5, %v243_v26 }
 0x162   :  { %v253_v28 = vpop.permute.xlu0 %252 }
 0x163   :  { %v255_v29 = vmul.f32 %v253_v28, %v244_v27  ;;  %v150_v28 = vadd.f32 %v1208_v14, %v1206_v12 }
 0x165   :  { %257 = vrot.lane.b32.xlu1 %v255_v29, %s1101_s7 }
 0x166   :  { %v248_v30 = vpop.permute.xlu0 %247 }
 0x167   :  { %v250_v31 = vmul.f32 %v248_v30, %v244_v27 }
 0x1d7   :  { %v258_v32 = vpop.permute.xlu1 %257 }
 0x1d8   :  { %v260_v33 = vadd.f32 %v258_v32, %v250_v31 }
 0x1da   :  { %1031 = vtanh.f32 %v260_v33 }
 0x1e4   :  { %v1032_v34 = vpop.eup %1031 }
 0x1e5   :  { %263 = vrot.lane.b32.xlu1 %v1032_v34, %s1101_s7 }
 0x257   :  { %v264_v35 = vpop.permute.xlu1 %263 }
 0x258   :  { %v266_v36 = vmul.f32 %v264_v35, %v244_v27 }
 0x25a   :  { %v269_v37 = vpack.c.bf16 %v266_v36, %v266_v36 }
 0x25c   :  { %271 = vrot.lane.b32.xlu0 %v269_v37, %s1102_s3 }
 0x2ce   :  { %v272_v38 = vpop.permute.xlu0 %271 }
 0x2cf   :  { %952 = vmatmul.mubr.msk.bf16.vlgmr.msra.gmra.mrb[4].mxu1 %vm36_vm0, %v272_v38 }
 0x2d0   :  { %964 = vmatpush3.bf16.msra.mxu1 %v1157_v2  ;;  %967 = vmatprep.mubr.msk.bf16.mxu1 %vm1100_vm1, %v1099_v1 }
 0x2d1   :  { %965 = vmatprep.subr.bf16.mxu1 %v1099_v1 }
 0x2d4   :  { %966 = vmatpush3.bf16.msra.mxu1 %v1166_v4 }
 0x2d5   :  { %979 = vmatprep.subr.bf16.mxu1 %v1099_v1 }
 0x3a2   :  { %v310_v40 = vpop.f32.mrb[4].mxu1 }
 0x3a3   :  { %v316_v41 = vadd.f32 %v310_v40, %v142_v39  ;;  %v953_v42 = vpop.f32.mrb[5].mxu1 }
 0x3a4   :  { %v313_v43 = vpop.f32.mrb[6].mxu1 }
 0x3a5   :  { %1033 = vtanh.f32 %v316_v41  ;;  %v954_v44 = vpop.f32.mrb[7].mxu1  ;;  %v317_v46 = vmul.f32 0.5, %v316_v41 }
 0x3a7   :  { %1035 = vtanh.f32 %v317_v46 }
 0x3af   :  { %v1034_v45 = vpop.eup %1033 }
 0x3b0   :  { %324 = vrot.lane.b32.xlu1 %v1034_v45, %s1101_s7 }
 0x3b1   :  { %v1036_v47 = vpop.eup %1035 }
 0x3b2   :  { %v319_v48 = vadd.f32 1.0, %v1036_v47 }
 0x3b4   :  { %v320_v49 = vmul.f32 0.5, %v319_v48  ;;  %v155_v48 = vadd.f32 %v1206_v12, %v1240_v62 }
 0x3b6   :  { %v322_v52 = vmul.f32 %v320_v49, %v260_v33 }
 0x422   :  { %v325_v50 = vpop.permute.xlu1 %324 }
 0x423   :  { %v327_v51 = vmul.f32 %v325_v50, %v320_v49 }
 0x425   :  { %329 = vrot.lane.b32.xlu0 %v327_v51, %s1101_s7 }
 0x497   :  { %v330_v53 = vpop.permute.xlu0 %329 }
 0x498   :  { %v332_v54 = vadd.f32 %v330_v53, %v322_v52 }
 0x49a   :  { %1037 = vtanh.f32 %v332_v54 }
 0x4a4   :  { %v1038_v57 = vpop.eup %1037 }
 0x4a5   :  { %335 = vrot.lane.b32.xlu1 %v1038_v57, %s1101_s7 }
 0x517   :  { %v336_v58 = vpop.permute.xlu1 %335 }
 0x518   :  { %v338_v59 = vmul.f32 %v336_v58, %v320_v49 }
 0x51a   :  { %v341_v60 = vpack.c.bf16 %v338_v59, %v338_v59 }
 0x51c   :  { %343 = vrot.lane.b32.xlu0 %v341_v60, %s1102_s3 }
 0x58e   :  { %v344_v3 = vpop.permute.xlu0 %343 }
 0x58f   :  { %960 = vmatmul.mubr.msk.bf16.vlgmr.msra.gmra.mrb[8].mxu0 %vm36_vm0, %v344_v3 }
 0x590   :  { %972 = vmatpush3.bf16.msra.mxu0 %v1157_v2  ;;  %975 = vmatprep.mubr.msk.bf16.mxu0 %vm1100_vm1, %v1099_v1 }
 0x591   :  { %973 = vmatprep.subr.bf16.mxu0 %v1099_v1 }
 0x594   :  { %974 = vmatpush3.bf16.msra.mxu0 %v1166_v4 }
 0x595   :  { %987 = vmatprep.subr.bf16.mxu0 %v1099_v1 }
 0x662   :  { %v382_v6 = vpop.f32.mrb[8].mxu0 }
 0x663   :  { %v388_v7 = vadd.f32 %v382_v6, %v147_v5  ;;  %v961_v8 = vpop.f32.mrb[9].mxu0 }
 0x664   :  { %v385_v9 = vpop.f32.mrb[10].mxu0 }
 0x665   :  { %1039 = vtanh.f32 %v388_v7  ;;  %v962_v10 = vpop.f32.mrb[11].mxu0  ;;  %v389_v15 = vmul.f32 0.5, %v388_v7 }
 0x667   :  { %1041 = vtanh.f32 %v389_v15 }
 0x66f   :  { %v1040_v13 = vpop.eup %1039 }
 0x670   :  { %396 = vrot.lane.b32.xlu1 %v1040_v13, %s1101_s7  ;;  %v158_v13 = vadd.f32 %v1206_v12, %v1244_v0 }
 0x671   :  { %v1042_v16 = vpop.eup %1041 }
 0x672   :  { %v391_v17 = vadd.f32 1.0, %v1042_v16 }
 0x674   :  { %v392_v18 = vmul.f32 0.5, %v391_v17 }
 0x676   :  { %v394_v21 = vmul.f32 %v392_v18, %v332_v54 }
 0x6e2   :  { %v397_v19 = vpop.permute.xlu1 %396 }
 0x6e3   :  { %v399_v20 = vmul.f32 %v397_v19, %v392_v18 }
 0x6e5   :  { %401 = vrot.lane.b32.xlu0 %v399_v20, %s1101_s7 }
 0x757   :  { %v402_v11 = vpop.permute.xlu0 %401 }
 0x758   :  { %v404_v22 = vadd.f32 %v402_v11, %v394_v21 }
 0x75a   :  { %1043 = vtanh.f32 %v404_v22 }
 0x764   :  { %v1044_v23 = vpop.eup %1043 }
 0x765   :  { %407 = vrot.lane.b32.xlu1 %v1044_v23, %s1101_s7 }
 0x7d7   :  { %v408_v24 = vpop.permute.xlu1 %407 }
 0x7d8   :  { %v410_v25 = vmul.f32 %v408_v24, %v392_v18 }
 0x7da   :  { %v413_v26 = vpack.c.bf16 %v410_v25, %v410_v25 }
 0x7dc   :  { %415 = vrot.lane.b32.xlu0 %v413_v26, %s1102_s3 }
 0x84e   :  { %v416_v27 = vpop.permute.xlu0 %415 }
 0x84f   :  { %968 = vmatmul.mubr.msk.bf16.vlgmr.msra.gmra.mrb[8].mxu1 %vm36_vm0, %v416_v27 }
 0x850   :  { %980 = vmatpush3.bf16.msra.mxu1 %v1157_v2  ;;  %983 = vmatprep.mubr.msk.bf16.mxu1 %vm1100_vm1, %v1099_v1 }
 0x851   :  { %981 = vmatprep.subr.bf16.mxu1 %v1099_v1 }
 0x854   :  { %982 = vmatpush3.bf16.msra.mxu1 %v1166_v4 }
 0x855   :  { %995 = vmatprep.subr.bf16.mxu1 %v1099_v1 }
 0x922   :  { %v454_v29 = vpop.f32.mrb[8].mxu1 }
 0x923   :  { %v460_v30 = vadd.f32 %v454_v29, %v150_v28  ;;  %v969_v31 = vpop.f32.mrb[9].mxu1 }
 0x924   :  { %v457_v32 = vpop.f32.mrb[10].mxu1  ;;  %v163_v31 = vadd.f32 %v1238_v61, %v1206_v12 }
 0x925   :  { %1045 = vtanh.f32 %v460_v30  ;;  %v970_v33 = vpop.f32.mrb[11].mxu1  ;;  %v461_v35 = vmul.f32 0.5, %v460_v30 }
 0x927   :  { %1047 = vtanh.f32 %v461_v35 }
 0x92f   :  { %v1046_v34 = vpop.eup %1045 }
 0x930   :  { %468 = vrot.lane.b32.xlu1 %v1046_v34, %s1101_s7 }
 0x931   :  { %v1048_v36 = vpop.eup %1047 }
 0x932   :  { %v463_v37 = vadd.f32 1.0, %v1048_v36 }
 0x934   :  { %v464_v38 = vmul.f32 0.5, %v463_v37 }
 0x936   :  { %v466_v41 = vmul.f32 %v464_v38, %v404_v22 }
 0x9a2   :  { %v469_v39 = vpop.permute.xlu1 %468 }
 0x9a3   :  { %v471_v40 = vmul.f32 %v469_v39, %v464_v38 }
 0x9a5   :  { %473 = vrot.lane.b32.xlu0 %v471_v40, %s1101_s7 }
 0xa17   :  { %v474_v14 = vpop.permute.xlu0 %473 }
 0xa18   :  { %v476_v42 = vadd.f32 %v474_v14, %v466_v41 }
 0xa1a   :  { %1049 = vtanh.f32 %v476_v42 }
 0xa24   :  { %v1050_v43 = vpop.eup %1049 }
 0xa25   :  { %479 = vrot.lane.b32.xlu1 %v1050_v43, %s1101_s7 }
 0xa97   :  { %v480_v44 = vpop.permute.xlu1 %479 }
 0xa98   :  { %v482_v45 = vmul.f32 %v480_v44, %v464_v38 }
 0xa9a   :  { %v485_v46 = vpack.c.bf16 %v482_v45, %v482_v45 }
 0xa9c   :  { %487 = vrot.lane.b32.xlu0 %v485_v46, %s1102_s3 }
 0xb0e   :  { %v488_v47 = vpop.permute.xlu0 %487 }
 0xb0f   :  { %976 = vmatmul.mubr.msk.bf16.vlgmr.msra.gmra.mrb[12].mxu0 %vm36_vm0, %v488_v47 }
 0xb10   :  { %988 = vmatpush3.bf16.msra.mxu0 %v1157_v2  ;;  %991 = vmatprep.mubr.msk.bf16.mxu0 %vm1100_vm1, %v1099_v1 }
 0xb11   :  { %989 = vmatprep.subr.bf16.mxu0 %v1099_v1 }
 0xb14   :  { %990 = vmatpush3.bf16.msra.mxu0 %v1166_v4 }
 0xb15   :  { %1003 = vmatprep.subr.bf16.mxu0 %v1099_v1 }
 0xbe2   :  { %v526_v49 = vpop.f32.mrb[12].mxu0 }
 0xbe3   :  { %v532_v50 = vadd.f32 %v526_v49, %v155_v48  ;;  %v977_v51 = vpop.f32.mrb[13].mxu0 }
 0xbe4   :  { %v529_v52 = vpop.f32.mrb[14].mxu0 }
 0xbe5   :  { %1051 = vtanh.f32 %v532_v50  ;;  %v978_v53 = vpop.f32.mrb[15].mxu0  ;;  %v533_v55 = vmul.f32 0.5, %v532_v50  ;;  %v166_v50 = vadd.f32 %v1242_v63, %v1206_v12 }
 0xbe7   :  { %1053 = vtanh.f32 %v533_v55 }
 0xbef   :  { %v1052_v54 = vpop.eup %1051 }
 0xbf0   :  { %540 = vrot.lane.b32.xlu1 %v1052_v54, %s1101_s7 }
 0xbf1   :  { %v1054_v56 = vpop.eup %1053 }
 0xbf2   :  { %v535_v57 = vadd.f32 1.0, %v1054_v56 }
 0xbf4   :  { %v536_v58 = vmul.f32 0.5, %v535_v57 }
 0xbf6   :  { %v538_v3 = vmul.f32 %v536_v58, %v476_v42 }
 0xc62   :  { %v541_v59 = vpop.permute.xlu1 %540 }
 0xc63   :  { %v543_v60 = vmul.f32 %v541_v59, %v536_v58 }
 0xc65   :  { %545 = vrot.lane.b32.xlu0 %v543_v60, %s1101_s7 }
 0xcd7   :  { %v546_v62 = vpop.permute.xlu0 %545 }
 0xcd8   :  { %v548_v5 = vadd.f32 %v546_v62, %v538_v3 }
 0xcda   :  { %1055 = vtanh.f32 %v548_v5 }
 0xce4   :  { %v1056_v6 = vpop.eup %1055 }
 0xce5   :  { %551 = vrot.lane.b32.xlu1 %v1056_v6, %s1101_s7  ;;  %v1025_v6 = vld [vmem:[%s1343_s4] sm:$0xff]  }
 0xd57   :  { %v552_v7 = vpop.permute.xlu1 %551 }
 0xd58   :  { %v554_v8 = vmul.f32 %v552_v7, %v536_v58  ;;  %v1026_v7 = vld [vmem:[%s1343_s4 + $0x8] sm:$0xff]  }
 0xd5a   :  { %v557_v9 = vpack.c.bf16 %v554_v8, %v554_v8 }
 0xd5c   :  { %559 = vrot.lane.b32.xlu0 %v557_v9, %s1102_s3 }
 0xdce   :  { %v560_v10 = vpop.permute.xlu0 %559 }
 0xdcf   :  { %984 = vmatmul.mubr.msk.bf16.vlgmr.msra.gmra.mrb[12].mxu1 %vm36_vm0, %v560_v10 }
 0xdd0   :  { %996 = vmatpush3.bf16.msra.mxu1 %v1157_v2  ;;  %999 = vmatprep.mubr.msk.bf16.mxu1 %vm1100_vm1, %v1099_v1 }
 0xdd1   :  { %997 = vmatprep.subr.bf16.mxu1 %v1099_v1 }
 0xdd4   :  { %998 = vmatpush3.bf16.msra.mxu1 %v1166_v4 }
 0xea2   :  { %v598_v15 = vpop.f32.mrb[12].mxu1 }
 0xea3   :  { %v604_v16 = vadd.f32 %v598_v15, %v158_v13  ;;  %v985_v17 = vpop.f32.mrb[13].mxu1 }
 0xea4   :  { %v601_v18 = vpop.f32.mrb[14].mxu1  ;;  %v890_v17 = vld [vmem:[%s1344_s5] ss:$0 sm:$0xff] }
 0xea5   :  { %1057 = vtanh.f32 %v604_v16  ;;  %v986_v19 = vpop.f32.mrb[15].mxu1  ;;  %v605_v2 = vmul.f32 0.5, %v604_v16 }
 0xea7   :  { %1059 = vtanh.f32 %v605_v2 }
 0xeaf   :  { %v1058_v20 = vpop.eup %1057 }
 0xeb0   :  { %612 = vrot.lane.b32.xlu1 %v1058_v20, %s1101_s7 }
 0xeb1   :  { %v1060_v21 = vpop.eup %1059 }
 0xeb2   :  { %v607_v11 = vadd.f32 1.0, %v1060_v21 }
 0xeb4   :  { %v608_v22 = vmul.f32 0.5, %v607_v11 }
 0xeb6   :  { %v610_v4 = vmul.f32 %v608_v22, %v548_v5 }
 0xf22   :  { %v613_v23 = vpop.permute.xlu1 %612 }
 0xf23   :  { %v615_v24 = vmul.f32 %v613_v23, %v608_v22 }
 0xf25   :  { %617 = vrot.lane.b32.xlu0 %v615_v24, %s1101_s7 }
 0xf97   :  { %v618_v0 = vpop.permute.xlu0 %617 }
 0xf98   :  { %v620_v25 = vadd.f32 %v618_v0, %v610_v4 }
 0xf9a   :  { %1061 = vtanh.f32 %v620_v25 }
 0xfa4   :  { %v1062_v26 = vpop.eup %1061 }
 0xfa5   :  { %623 = vrot.lane.b32.xlu1 %v1062_v26, %s1101_s7 }
0x1017   :  { %v624_v27 = vpop.permute.xlu1 %623 }
0x1018   :  { %v626_v28 = vmul.f32 %v624_v27, %v608_v22 }
0x101a   :  { %v629_v29 = vpack.c.bf16 %v626_v28, %v626_v28 }
0x101c   :  { %631 = vrot.lane.b32.xlu0 %v629_v29, %s1102_s3 }
0x108e   :  { %v632_v30 = vpop.permute.xlu0 %631 }
0x108f   :  { %992 = vmatmul.mubr.msk.bf16.vlgmr.msra.gmra.mrb[16].mxu0 %vm36_vm0, %v632_v30 }
0x1090   :  { %1007 = vmatprep.mubr.msk.bf16.mxu0 %vm1100_vm1, %v1099_v1  ;;  %1004 = vmatpush3.bf16.msra.mxu0 %v1025_v6 }
0x1091   :  { %1005 = vmatprep.subr.bf16.mxu0 %v1099_v1 }
0x1094   :  { %1006 = vmatpush3.bf16.msra.mxu0 %v1026_v7 }
0x1162   :  { %v670_v32 = vpop.f32.mrb[16].mxu0 }
0x1163   :  { %v676_v33 = vadd.f32 %v670_v32, %v163_v31  ;;  %v993_v34 = vpop.f32.mrb[17].mxu0 }
0x1164   :  { %v673_v35 = vpop.f32.mrb[18].mxu0 }
0x1165   :  { %1063 = vtanh.f32 %v676_v33  ;;  %v994_v36 = vpop.f32.mrb[19].mxu0  ;;  %v677_v38 = vmul.f32 0.5, %v676_v33 }
0x1167   :  { %1065 = vtanh.f32 %v677_v38 }
0x116f   :  { %v1064_v37 = vpop.eup %1063 }
0x1170   :  { %684 = vrot.lane.b32.xlu1 %v1064_v37, %s1101_s7 }
0x1171   :  { %v1066_v39 = vpop.eup %1065 }
0x1172   :  { %v679_v40 = vadd.f32 1.0, %v1066_v39 }
0x1174   :  { %v680_v41 = vmul.f32 0.5, %v679_v40 }
0x1176   :  { %v682_v43 = vmul.f32 %v680_v41, %v620_v25 }
0x11e2   :  { %v685_v14 = vpop.permute.xlu1 %684 }
0x11e3   :  { %v687_v42 = vmul.f32 %v685_v14, %v680_v41 }
0x11e5   :  { %689 = vrot.lane.b32.xlu0 %v687_v42, %s1101_s7 }
0x1257   :  { %v690_v61 = vpop.permute.xlu0 %689 }
0x1258   :  { %v692_v44 = vadd.f32 %v690_v61, %v682_v43 }
0x125a   :  { %1067 = vtanh.f32 %v692_v44 }
0x1264   :  { %v1068_v45 = vpop.eup %1067 }
0x1265   :  { %695 = vrot.lane.b32.xlu1 %v1068_v45, %s1101_s7 }
0x12d7   :  { %v696_v46 = vpop.permute.xlu1 %695 }
0x12d8   :  { %v698_v47 = vmul.f32 %v696_v46, %v680_v41 }
0x12da   :  { %v701_v48 = vpack.c.bf16 %v698_v47, %v698_v47 }
0x12dc   :  { %703 = vrot.lane.b32.xlu0 %v701_v48, %s1102_s3 }
0x134e   :  { %v704_v49 = vpop.permute.xlu0 %703 }
0x134f   :  { %1000 = vmatmul.mubr.msk.bf16.vlgmr.msra.gmra.mrb[16].mxu1 %vm36_vm0, %v704_v49 }
0x1422   :  { %v742_v51 = vpop.f32.mrb[16].mxu1 }
0x1423   :  { %v748_v52 = vadd.f32 %v742_v51, %v166_v50  ;;  %v1001_v53 = vpop.f32.mrb[17].mxu1 }
0x1424   :  { %v745_v54 = vpop.f32.mrb[18].mxu1 }
0x1425   :  { %1069 = vtanh.f32 %v748_v52  ;;  %v1002_v55 = vpop.f32.mrb[19].mxu1  ;;  %v749_v57 = vmul.f32 0.5, %v748_v52 }
0x1427   :  { %1071 = vtanh.f32 %v749_v57 }
0x142f   :  { %v1070_v56 = vpop.eup %1069 }
0x1430   :  { %756 = vrot.lane.b32.xlu1 %v1070_v56, %s1101_s7 }
0x1431   :  { %v1072_v58 = vpop.eup %1071 }
0x1432   :  { %v751_v59 = vadd.f32 1.0, %v1072_v58 }
0x1434   :  { %v752_v60 = vmul.f32 0.5, %v751_v59 }
0x1436   :  { %v754_v5 = vmul.f32 %v752_v60, %v692_v44 }
0x14a2   :  { %v757_v3 = vpop.permute.xlu1 %756 }
0x14a3   :  { %v759_v62 = vmul.f32 %v757_v3, %v752_v60 }
0x14a5   :  { %761 = vrot.lane.b32.xlu0 %v759_v62, %s1101_s7 }
0x1517   :  { %v762_v12 = vpop.permute.xlu0 %761 }
0x1518   :  { %v764_v63 = vadd.f32 %v762_v12, %v754_v5 }
0x151a   :  { %1073 = vtanh.f32 %v764_v63 }
0x1524   :  { %v1074_v8 = vpop.eup %1073 }
0x1525   :  { %767 = vrot.lane.b32.xlu1 %v1074_v8, %s1101_s7 }
0x1597   :  { %v768_v9 = vpop.permute.xlu1 %767 }
0x1598   :  { %v770_v10 = vmul.f32 %v768_v9, %v752_v60 }
0x159a   :  { %v784_v13 = vpack.c.bf16 %v770_v10, %v770_v10  ;;  %772 = vrot.lane.b32.xlu1 %v770_v10, %s1102_s3 }
0x159c   :  { %797 = vrot.lane.b32.xlu0 %v784_v13, %s1102_s3 }
0x15a0   :  { %777 = vrot.lane.b32.xlu0 %v764_v63, %s1103_s27 }
0x160c   :  { %v773_v15 = vpop.permute.xlu1 %772 }
0x160d   :  { %775 = vst.msk [vmem:[#allocation3] sm:$0xff] %vm36_vm0, %v773_v15 }
0x160e   :  { %v798_v16 = vpop.permute.xlu0 %797 }
0x160f   :  { %1008 = vmatmul.mubr.msk.bf16.vlgmr.msra.gmra.mrb[20].mxu0 %vm36_vm0, %v798_v16 }
0x1612   :  { %v778_v1 = vpop.permute.xlu0 %777 }
0x1613   :  { %780 = vst.msk [vmem:[#allocation4] sm:$0xff] %vm36_vm0, %v778_v1 }
0x16e2   :  { %v848_v18 = vpop.f32.mrb[20].mxu0 }
0x16e3   :  { %v849_v19 = vadd.f32 %v890_v17, %v848_v18  ;;  %v1009_v20 = vpop.f32.mrb[21].mxu0 }
0x16e4   :  { %v851_v2 = vpop.f32.mrb[22].mxu0 }
0x16e5   :  { %854 = vst [vmem:[#allocation5] sm:$0xff] %v849_v19  ;;  %v1010_v21 = vpop.f32.mrb[23].mxu0 }
0x16e6   :  { %1086 = shalt.err (!%p1083_p4)
}
0x16e7   :  { %s1087_s5 = scalar_lea.hbm %s1347_s8, 128 }
0x16e8   :  { %p1088_p5 = scmp.ne.s32.totalorder %s1347_s8, %s1087_s5  ;;  %p1091_p6 = scmp.lt.u32.totalorder %s1087_s5, %s1347_s8 }
0x16ea   :  { %p1093_p7 = pnand %p1091_p6, %p1088_p5 }
0x16ec   :  { %1096 = shalt.err (!%p1093_p7)
}
0x16ed   :  { %864 = dma.vmem_to_hbm [thread:$0]  %s862_s30, 128, %s1347_s8, [#allocation6]  }
0x16ee   :  { %1097 = dma.done.wait [#allocation6], 128  }
0x16ef   :  { %1098 = vsyncadd [#allocation6], 4294967168 }
0x16f0   :  { %868 = vsyncpa [#allocation6], 1 }

</bundles_post_ra>
